<compile_context>
chip_gen: v6e
topology: v6e:2x2x1
jax: 0.10.0
libtpu: 0.0.40
codegen_flags: <defaults>
</compile_context>

<pallas_src>
import functools

import jax
import jax.numpy as jnp
from jax.experimental import pallas as pl
from jax.experimental.pallas import tpu as pltpu


def _round_up(a, b):
    return (a + b - 1) // b * b


def _tpu_info():
    """Returns (vmem_capacity_bytes, multi_tensorcore) with safe fallbacks."""
    vmem_cap = 64 * 1024 * 1024  # conservative default (v7x per-TC VMEM)
    try:
        vmem_cap = int(pltpu.get_tpu_info().vmem_capacity_bytes)
    except Exception:
        pass
    multi_tc = False
    try:
        kind = (jax.devices()[0].device_kind or "").lower()
        multi_tc = "v7" in kind  # v7x: 2 TensorCores share the grid
    except Exception:
        pass
    return vmem_cap, multi_tc


def _moving_avg_kernel(x_ref, o_ref, *scratch, L, pad, kernel_size, stride, l_out):
    """One (time, lanes) tile of the fused replicate-pad + sliding mean.

    x_ref:   (L, tn)      raw series (time on sublanes, channels/batch on lanes)
    o_ref:   (l_out, tn)  pooled output
    scratch: 0, 1 or 2 f32 VMEM buffers (R, tn), R >= l_pad + 16; used as
             ping-pong storage for the padded series / doubling partial sums.
    """
    K = kernel_size
    tn = x_ref.shape[1]
    l_pad = L + 2 * pad
    l_dense = l_pad - K + 1          # number of stride-1 windows
    pad_al = _round_up(pad, 8)       # sublane-aligned start of the interior rows
    off0 = pad_al - pad              # row where the replicate-padded series starts
    inv_k = jnp.float32(1.0 / K)

    # ---------------- small window, stride 1: XLU rolls, no scratch ----------------
    if K <= 8 and stride == 1:
        xv = x_ref[...].astype(jnp.float32)
        rows = _round_up(l_pad, 8)
        parts = []
        if pad > 0:
            parts.append(jnp.broadcast_to(xv[0:1], (pad, tn)))      # front padding
        parts.append(xv)
        extra = rows - (pad + L)                                     # back padding + align filler
        if extra > 0:
            parts.append(jnp.broadcast_to(xv[L - 1:L], (extra, tn)))
        v = jnp.concatenate(parts, axis=0) if len(parts) > 1 else parts[0]
        acc = v
        for k in range(1, K):
            # result[i] = v[i + k]  (wrap-around only lands in rows we never use)
            acc = acc + pltpu.roll(v, shift=rows - k, axis=0)
        o_ref[...] = (acc[0:l_out] * inv_k).astype(o_ref.dtype)
        return

    # -------- build the replicate-padded f32 series in VMEM (padding fused) --------
    buf_a = scratch[0]
    buf_a[pl.ds(pad_al, L), :] = x_ref[...].astype(jnp.float32)      # aligned L-row store
    if pad > 0:
        first = x_ref[pl.ds(0, 1), :].astype(jnp.float32)
        last = x_ref[pl.ds(L - 1, 1), :].astype(jnp.float32)
        buf_a[pl.ds(off0, pad), :] = jnp.broadcast_to(first, (pad, tn))
        buf_a[pl.ds(pad_al + L, pad), :] = jnp.broadcast_to(last, (pad, tn))

    # ---------------- small window, stride > 1: K strided (l_out) reads ----------------
    if K <= 8:
        acc = buf_a[pl.ds(off0, l_out, stride=stride), :]
        for k in range(1, K):
            acc = acc + buf_a[pl.ds(off0 + k, l_out, stride=stride), :]
        o_ref[...] = (acc * inv_k).astype(o_ref.dtype)
        return

    # ---------------- large window: recursive-doubling window sum ----------------
    # Width-w partial sums ping-pong between two disjoint buffers; stores always
    # start at row 0 and are rounded up to whole sublanes.  Rows past the valid
    # length only ever receive/read garbage that is provably never consumed by
    # a valid output row.
    buf_b = scratch[1]
    bufs = (buf_a, buf_b)
    rows = buf_a.shape[0]
    cur = 0              # buffer currently holding the width-w sums
    off_cur = off0       # row offset of those sums inside bufs[cur]

    acc = None
    acc_w = 0            # window width already folded into acc
    w = 1                # width of the partial sums currently held
    rem = K
    while rem > 0:
        if rem & 1:
            if stride == 1:
                piece = bufs[cur][pl.ds(off_cur + acc_w, l_dense), :]
            else:
                # strided piece read: acc stays (l_out, tn), no dense pass
                piece = bufs[cur][pl.ds(off_cur + acc_w, l_out, stride=stride), :]
            acc = piece if acc is None else acc + piece
            acc_w += w
        rem >>= 1
        if rem > 0:
            n = l_pad - 2 * w + 1                              # valid width-2w length
            n_al = min(_round_up(n, 8), rows - off_cur - w)    # sublane-aligned, in-bounds
            a0 = bufs[cur][pl.ds(off_cur, n_al), :]
            a1 = bufs[cur][pl.ds(off_cur + w, n_al), :]
            bufs[1 - cur][pl.ds(0, n_al), :] = a0 + a1         # disjoint destination
            cur, off_cur, w = 1 - cur, 0, 2 * w

    o_ref[...] = (acc * inv_k).astype(o_ref.dtype)


def moving_avg(x, kernel_size, stride):
    """Pallas moving-average / trend extraction. x: (B, L, C) -> (B, L_out, C)."""
    B, L, C = x.shape
    K = int(kernel_size)
    S = int(stride)
    pad = (K - 1) // 2
    l_pad = L + 2 * pad
    l_out = (l_pad - K) // S + 1
    dtype = x.dtype
    itemsize = int(jnp.dtype(dtype).itemsize)

    vmem_cap, multi_tc = _tpu_info()
    budget = int(0.45 * vmem_cap)          # for 2x(in+out) blocks + scratch + temps

    n_scratch = 2 if K > 8 else (1 if S > 1 else 0)
    R = (_round_up(l_pad, 8) + 16) if n_scratch else 0

    # per-lane VMEM bytes: double-buffered in/out blocks + f32 ping-pong scratch
    # + slack for the full-slab value temporaries of the doubling / roll sums.
    per_lane = 2 * (L + l_out) * itemsize + n_scratch * R * 4 + 2 * l_pad * 4
    per_128 = 128 * per_lane

    kernel = functools.partial(
        _moving_avg_kernel,
        L=L, pad=pad, kernel_size=K, stride=S, l_out=l_out,
    )

    def _vmem_limit(lanes):
        need = lanes * per_lane
        return int(min(0.75 * vmem_cap, max(32 * 1024 * 1024, need * 1.5)))

    # ---------------- native-layout path (no wrapper transposes) ----------------
    use_native = C >= 128
    tc = grid_c = None
    if use_native:
        prefer_split = multi_tc and B == 1          # keep both v7x TCs busy
        full_c_fits = C * per_lane <= budget
        if full_c_fits and not (prefer_split and C % 128 == 0 and C >= 256):
            tc, grid_c = C, 1                       # full-channel block (last dim = full dim)
        elif C % 128 == 0:
            n_cols = C // 128
            cols_cap = max(1, budget // per_128)
            divisors = [d for d in range(1, n_cols + 1) if n_cols % d == 0]
            cols = max([d for d in divisors if d <= cols_cap] or [1])
            if prefer_split and cols == n_cols and n_cols >= 2:
                cols = max(d for d in divisors if d < n_cols)
            tc, grid_c = 128 * cols, n_cols // cols
        else:
            use_native = False                      # ragged large C: fall back to lane-fold

    if use_native:
        scratch = [pltpu.VMEM((R, tc), jnp.float32) for _ in range(n_scratch)]
        return pl.pallas_call(
            kernel,
            out_shape=jax.ShapeDtypeStruct((B, l_out, C), dtype),
            grid_spec=pltpu.PrefetchScalarGridSpec(
                num_scalar_prefetch=0,
                grid=(B, grid_c),
                in_specs=[pl.BlockSpec((pl.Squeezed(), L, tc), lambda b, j: (b, 0, j))],
                out_specs=pl.BlockSpec((pl.Squeezed(), l_out, tc), lambda b, j: (b, 0, j)),
                scratch_shapes=scratch,
            ),
            compiler_params=pltpu.CompilerParams(
                dimension_semantics=("parallel", "parallel"),
                vmem_limit_bytes=_vmem_limit(tc),
            ),
        )(x)

    # ---------------- small-C fallback: fold (B, C) onto the lane axis ----------------
    N = B * C
    x2 = jnp.transpose(x, (1, 0, 2)).reshape(L, N)

    n_cols = _round_up(N, 128) // 128
    cols_cap = max(1, budget // per_128)
    cols = max(1, min(n_cols, cols_cap))
    if multi_tc and n_cols >= 2:
        cols = min(cols, (n_cols + 1) // 2)         # >= 2 grid steps only on v7x (2 TCs)
    tn = cols * 128
    N_pad = _round_up(N, tn)
    if N_pad != N:
        x2 = jnp.pad(x2, ((0, 0), (0, N_pad - N)))

    scratch = [pltpu.VMEM((R, tn), jnp.float32) for _ in range(n_scratch)]
    out2 = pl.pallas_call(
        kernel,
        out_shape=jax.ShapeDtypeStruct((l_out, N_pad), dtype),
        grid_spec=pltpu.PrefetchScalarGridSpec(
            num_scalar_prefetch=0,
            grid=(N_pad // tn,),
            in_specs=[pl.BlockSpec((L, tn), lambda j: (0, j))],
            out_specs=pl.BlockSpec((l_out, tn), lambda j: (0, j)),
            scratch_shapes=scratch,
        ),
        compiler_params=pltpu.CompilerParams(
            dimension_semantics=("parallel",),
            vmem_limit_bytes=_vmem_limit(tn),
        ),
    )(x2)

    out2 = out2[:, :N]
    return jnp.transpose(out2.reshape(l_out, B, C), (1, 0, 2))


def moving_avg_ref(x, kernel_size, stride):
    """Pure-JAX reference mirroring the PyTorch module."""
    B, L, C = x.shape
    pad = (kernel_size - 1) // 2
    front = jnp.repeat(x[:, 0:1, :], pad, axis=1)
    end = jnp.repeat(x[:, -1:, :], pad, axis=1)
    xp = jnp.concatenate([front, x, end], axis=1)
    l_pad = L + 2 * pad
    l_out = (l_pad - kernel_size) // stride + 1
    cols = [
        xp[:, t * stride: t * stride + kernel_size, :].mean(axis=1)
        for t in range(l_out)
    ]
    return jnp.stack(cols, axis=1)


if __name__ == "__main__":
    key = jax.random.PRNGKey(0)

    configs = [
        # (B, L, C, kernel_size, stride)
        (2, 16, 8, 5, 1),     # small window, small C  -> lane-fold + XLU-roll path
        (4, 32, 64, 25, 2),   # SegRNN default window  -> lane-fold + doubling + strided pieces
        (2, 48, 128, 25, 1),  # C >= 128               -> native-layout path (no wrapper transpose)
    ]
    for i, (B, L, C, K, S) in enumerate(configs):
        k = jax.random.fold_in(key, i)
        x = jax.random.normal(k, (B, L, C), dtype=jnp.float32)

        out = jax.block_until_ready(moving_avg(x, K, S))
        ref = moving_avg_ref(x, K, S)

        assert out.shape == ref.shape, (out.shape, ref.shape)
        assert jnp.allclose(out, ref, atol=1e-5, rtol=1e-5), f"mismatch in config {i}"

    print("KERNEL_OK")
</pallas_src>

<mosaic_0001>
module attributes {stable_mosaic.version = 11 : i64} {
  func.func @_moving_avg_kernel(%arg0: i32, %arg1: memref<16x128xf32, #tpu.memory_space<vmem>>, %arg2: memref<16x128xf32, #tpu.memory_space<vmem>>) attributes {dimension_semantics = [#tpu.dimension_semantics<parallel>], iteration_bounds = array<i64: 1>, scalar_prefetch = 0 : i64, scratch_operands = 0 : i64, tpu.core_type = #tpu.core_type<tc>, window_params = [{transform_indices = @transform_0, window_bounds = array<i64: 16, 128>}, {transform_indices = @transform_1, window_bounds = array<i64: 16, 128>}]} {
    %c0 = arith.constant 0 : index
    %c0_0 = arith.constant 0 : index
    %0 = vector.load %arg1[%c0, %c0_0] : memref<16x128xf32, #tpu.memory_space<vmem>>, vector<16x128xf32>
    %1 = vector.extract_strided_slice %0 {offsets = [0, 0], sizes = [1, 128], strides = [1, 1]} : vector<16x128xf32> to vector<1x128xf32>
    %2 = vector.shape_cast %1 : vector<1x128xf32> to vector<1x128xf32>
    %3 = vector.broadcast %2 : vector<1x128xf32> to vector<2x128xf32>
    %4 = vector.extract_strided_slice %0 {offsets = [15, 0], sizes = [1, 128], strides = [1, 1]} : vector<16x128xf32> to vector<1x128xf32>
    %5 = vector.shape_cast %4 : vector<1x128xf32> to vector<1x128xf32>
    %6 = vector.broadcast %5 : vector<1x128xf32> to vector<6x128xf32>
    %7 = tpu.concatenate %3, %0, %6 in 0 : vector<2x128xf32>, vector<16x128xf32>, vector<6x128xf32> -> vector<24x128xf32>
    %c23_i32 = arith.constant 23 : i32
    %8 = tpu.dynamic_rotate %7 by %c23_i32 dim 0 : vector<24x128xf32>, i32 -> vector<24x128xf32>
    %9 = arith.addf %7, %8 : vector<24x128xf32>
    %c22_i32 = arith.constant 22 : i32
    %10 = tpu.dynamic_rotate %7 by %c22_i32 dim 0 : vector<24x128xf32>, i32 -> vector<24x128xf32>
    %11 = arith.addf %9, %10 : vector<24x128xf32>
    %c21_i32 = arith.constant 21 : i32
    %12 = tpu.dynamic_rotate %7 by %c21_i32 dim 0 : vector<24x128xf32>, i32 -> vector<24x128xf32>
    %13 = arith.addf %11, %12 : vector<24x128xf32>
    %c20_i32 = arith.constant 20 : i32
    %14 = tpu.dynamic_rotate %7 by %c20_i32 dim 0 : vector<24x128xf32>, i32 -> vector<24x128xf32>
    %15 = arith.addf %13, %14 : vector<24x128xf32>
    %16 = vector.extract_strided_slice %15 {offsets = [0, 0], sizes = [16, 128], strides = [1, 1]} : vector<24x128xf32> to vector<16x128xf32>
    %cst = arith.constant 2.000000e-01 : f32
    %17 = vector.broadcast %cst : f32 to vector<16x128xf32>
    %18 = arith.mulf %16, %17 : vector<16x128xf32>
    %c0_1 = arith.constant 0 : index
    %c0_2 = arith.constant 0 : index
    %19 = vector.load %arg2[%c0_1, %c0_2] : memref<16x128xf32, #tpu.memory_space<vmem>>, vector<16x128xf32>
    tpu.vector_store %arg2[%c0_1, %c0_2], %18 {strides = array<i32>} : memref<16x128xf32, #tpu.memory_space<vmem>>, vector<16x128xf32>,
    return
  }
  func.func @transform_0(%arg0: i32) -> (i32, i32) {
    %c0_i32 = arith.constant 0 : i32
    %c0_i32_0 = arith.constant 0 : i32
    return %c0_i32, %arg0 : i32, i32
  }
  func.func @transform_1(%arg0: i32) -> (i32, i32) {
    %c0_i32 = arith.constant 0 : i32
    %c0_i32_0 = arith.constant 0 : i32
    return %c0_i32, %arg0 : i32, i32
  }
}

</mosaic_0001>

<bundles_post_ra>
// kernel: tpu_custom_call.1
= control target key start
LH: loop header
LB: loop body
LE: loop exit
PB: predicated region body
PF: predicated region fallthrough
CT: control target
= control target key end

     0   :  { %6 = vsyncpa [#allocation3], 0  ;;  %s179_s0 = inlined_call_operand.hbm [shape: f32[16,128], index: 0, kind: input, shape index: {}]   ;;  %s180_s1 = inlined_call_operand.hbm [shape: f32[16,128], index: 1, kind: output, shape index: {}]  }
   0x1   :  { %7 = vsyncpa [#allocation4], 0  ;;  %s147_s6 = smov [#allocation2]  }
   0x2   :  { %s13_s7 = sshll.u32 %s147_s6, 4  ;;  %s14_s7 = int_to_ptr.vmem [resolvable:$true] %s13_s7 }
   0x3   :  { %s111_s8 = scalar_lea.vmem %s14_s7, 256  ;;  %p116_p1 = scmp.lt.s32.totalorder %s14_s7, %s14_s7 }
   0x4   :  { %p112_p0 = scmp.ne.s32.totalorder %s14_s7, %s111_s8  ;;  %p117_p2 = scmp.lt.s32.totalorder %s111_s8, %s111_s8 }
   0x6   :  { %p118_p3 = por %p117_p2, %p116_p1 }
   0x8   :  { %p119_p4 = pnand %p118_p3, %p112_p0 }
   0xa   :  { %122 = shalt.err (!%p119_p4)
}
   0xb   :  { %s148_s9 = smov 128   ;;  %s149_s10 = smov 8  }
   0xc   :  { %19 = dma.hbm_to_vmem [thread:$0]  %s179_s0, 256, %s14_s7, [#allocation3], %s148_s9, %s148_s9, %s149_s10  }
   0xd   :  { %143 = dma.done.wait [#allocation3], 256  }
   0xe   :  { %144 = vsyncadd [#allocation3], 4294967040  ;;  %v25_v0 = vlaneseq  ;;  %v23_v4 = vld [vmem:[#allocation2] sm:$0xff]  ;;  %v24_v5 = vld [vmem:[#allocation2 + $0x8] sm:$0xff]  ;;  %vm35_vm0 = vcmask 1041408   ;;  %s150_s0 = smov [#allocation5]  }
   0xf   :  { %v36_v7 = vrot.slane %v23_v4, 6  ;;  %v37_v8 = vrot.slane %v24_v5, 6  ;;  %s87_s13 = sshll.u32 %s150_s0, 4  ;;  %s88_s13 = int_to_ptr.vmem [resolvable:$true] %s87_s13 }
  0x10   :  { %v26_v1 = vshrl.u32 %v25_v0, 7  ;;  %s123_s14 = scalar_lea.vmem %s88_s13, 256  ;;  %p128_p6 = scmp.lt.s32.totalorder %s88_s13, %s88_s13 }
  0x11   :  { %v38_v10 = vsel %vm35_vm0, %v36_v7, %v37_v8  ;;  %p124_p5 = scmp.ne.s32.totalorder %s88_s13, %s123_s14  ;;  %p129_p7 = scmp.lt.s32.totalorder %s123_s14, %s123_s14 }
  0x12   :  { %v27_v2 = vsub.s32 0, %v26_v1  ;;  %v31_v3 = vsub.s32 7, %v26_v1  ;;  %vm49_vm1 = vcmp.lt.s32.totalorder %v26_v1, 7  ;;  %vm57_vm2 = vcmp.lt.s32.totalorder %v26_v1, 6 }
  0x13   :  { %vm65_vm3 = vcmp.lt.s32.totalorder %v26_v1, 5  ;;  %v45_v14 = vrot.slane %v38_v10, 1  ;;  %v55_v16 = vrot.slane %v38_v10, 2  ;;  %v63_v18 = vrot.slane %v38_v10, 3  ;;  %p130_p8 = por %p129_p7, %p128_p6 }
  0x14   :  { %v28_v6 = vrot.slane %v23_v4, %v27_v2  ;;  %v32_v9 = vrot.slane %v24_v5, %v31_v3  ;;  %v71_v20 = vrot.slane %v38_v10, 4  ;;  %vm73_vm4 = vcmp.lt.s32.totalorder %v26_v1, 4 }
  0x15   :  { %p131_p9 = pnand %p130_p8, %p124_p5 }
  0x16   :  { %v42_v11 = vsel %vm35_vm0, %v28_v6, %v36_v7  ;;  %v43_v12 = vsel %vm35_vm0, %v37_v8, %v32_v9 }
  0x17   :  { %v44_v13 = vrot.slane %v42_v11, 1  ;;  %v54_v15 = vrot.slane %v42_v11, 2  ;;  %v62_v17 = vrot.slane %v42_v11, 3  ;;  %v70_v19 = vrot.slane %v42_v11, 4 }
  0x18   :  { %v46_v23 = vrot.slane %v43_v12, 1  ;;  %v56_v24 = vrot.slane %v43_v12, 2  ;;  %v64_v26 = vrot.slane %v43_v12, 3  ;;  %v72_v30 = vrot.slane %v43_v12, 4 }
  0x19   :  { %v51_v21 = vsel %vm49_vm1, %v44_v13, %v45_v14  ;;  %v59_v22 = vsel %vm57_vm2, %v54_v15, %v55_v16  ;;  %v67_v27 = vsel %vm65_vm3, %v62_v17, %v63_v18  ;;  %v75_v33 = vsel %vm73_vm4, %v70_v19, %v71_v20 }
  0x1a   :  { %v52_v25 = vadd.f32 %v51_v21, %v42_v11  ;;  %v50_v28 = vsel %vm49_vm1, %v45_v14, %v46_v23  ;;  %v58_v29 = vsel %vm57_vm2, %v55_v16, %v56_v24  ;;  %v66_v34 = vsel %vm65_vm3, %v63_v18, %v64_v26 }
  0x1b   :  { %v53_v32 = vadd.f32 %v50_v28, %v38_v10  ;;  %v74_v37 = vsel %vm73_vm4, %v71_v20, %v72_v30 }
  0x1c   :  { %v60_v31 = vadd.f32 %v59_v22, %v52_v25 }
  0x1d   :  { %v61_v36 = vadd.f32 %v58_v29, %v53_v32 }
  0x1e   :  { %v68_v35 = vadd.f32 %v67_v27, %v60_v31 }
  0x1f   :  { %v69_v39 = vadd.f32 %v66_v34, %v61_v36 }
  0x20   :  { %v76_v38 = vadd.f32 %v75_v33, %v68_v35 }
  0x21   :  { %v77_v41 = vadd.f32 %v74_v37, %v69_v39 }
  0x22   :  { %v78_v40 = vmul.f32 0.2, %v76_v38 }
  0x23   :  { %v79_v42 = vmul.f32 0.2, %v77_v41 }
  0x24   :  { %80 = vst [vmem:[#allocation5] sm:$0xff] %v78_v40 }
  0x25   :  { %81 = vst [vmem:[#allocation5 + $0x8] sm:$0xff] %v79_v42 }
  0x26   :  { %134 = shalt.err (!%p131_p9)
}
  0x27   :  { %93 = dma.vmem_to_hbm [thread:$0]  %s88_s13, 256, %s180_s1, [#allocation4], %s148_s9, %s148_s9, %s149_s10  }
  0x28   :  { %145 = dma.done.wait [#allocation4], 256  }
  0x29   :  { %146 = vsyncadd [#allocation4], 4294967040 }
  0x2a   :  { %97 = vsyncpa [#allocation3], 1 }
  0x2b   :  { %98 = vsyncpa [#allocation4], 1 }

</bundles_post_ra>
